<compile_context>
chip_gen: v6e
topology: v6e:2x2x1
jax: 0.10.0
libtpu: 0.0.40
codegen_flags: <defaults>
</compile_context>

<pallas_src>
import math
from functools import partial

import jax
import jax.numpy as jnp
from jax.experimental import pallas as pl
from jax.experimental.pallas import tpu as pltpu

TM_MAX = 512                      # M tile for the GEMM path
COMPUTE_DTYPE = jnp.bfloat16      # MXU operand / activation storage dtype
VMEM_LIMIT = 32 * 1024 * 1024     # safe on v5e/v6e/v7x


def _rup(x, m):
    return (x + m - 1) // m * m


# ---------------------------------------------------------------------------
# Fused single-pass Pallas GEMM:  out = act((X @ W) * scale + bias [+ res])
#   X: (M, K), W: (K, N), scale/bias: (1, N) f32, res: (M, N)
# Grid is 1-D over M tiles; K and N are fully resident.
# ---------------------------------------------------------------------------
def _gemm_kernel(relu, has_res):
    def kernel(*refs):
        if has_res:
            x_ref, w_ref, s_ref, b_ref, r_ref, o_ref = refs
        else:
            x_ref, w_ref, s_ref, b_ref, o_ref = refs
            r_ref = None
        acc = jnp.dot(x_ref[...], w_ref[...],
                      preferred_element_type=jnp.float32)
        y = acc * s_ref[...] + b_ref[...]
        if has_res:
            y = y + r_ref[...].astype(jnp.float32)
        if relu:
            y = jnp.maximum(y, 0.0)
        o_ref[...] = y.astype(o_ref.dtype)
    return kernel


def _pick_tm(M):
    """M tile that divides M (no pad copy); split mid-sized M into >=2 steps."""
    if M % 8 == 0:
        if M <= TM_MAX:
            if M >= 256 and (M // 2) % 8 == 0:
                return M // 2
            return M
        d = (TM_MAX // 8) * 8
        while d >= 8:
            if M % d == 0:
                return d
            d -= 8
    return min(TM_MAX, _rup(M, 8))        # fallback: pad (not hit in this net)


def matmul_fused(x, w, scale, bias, res=None, relu=False,
                 out_dtype=COMPUTE_DTYPE, compute_dtype=COMPUTE_DTYPE):
    """Fused GEMM + BN/bias + optional residual + optional ReLU."""
    M, K = x.shape
    N = w.shape[1]
    tm = _pick_tm(M)
    Mp = _rup(M, tm)

    x = x.astype(compute_dtype)
    w = w.astype(compute_dtype)
    if Mp != M:
        x = jnp.pad(x, ((0, Mp - M), (0, 0)))
    scale = scale.reshape(1, N).astype(jnp.float32)
    bias = bias.reshape(1, N).astype(jnp.float32)

    ins = [x, w, scale, bias]
    in_specs = [
        pl.BlockSpec((tm, K), lambda i: (i, 0)),
        pl.BlockSpec((K, N), lambda i: (0, 0)),
        pl.BlockSpec((1, N), lambda i: (0, 0)),
        pl.BlockSpec((1, N), lambda i: (0, 0)),
    ]
    has_res = res is not None
    if has_res:
        r = res.astype(compute_dtype)
        if Mp != M:
            r = jnp.pad(r, ((0, Mp - M), (0, 0)))
        ins.append(r)
        in_specs.append(pl.BlockSpec((tm, N), lambda i: (i, 0)))

    out = pl.pallas_call(
        _gemm_kernel(relu, has_res),
        out_shape=jax.ShapeDtypeStruct((Mp, N), out_dtype),
        grid=(Mp // tm,),
        in_specs=in_specs,
        out_specs=pl.BlockSpec((tm, N), lambda i: (i, 0)),
        compiler_params=pltpu.CompilerParams(
            dimension_semantics=("parallel",),
            vmem_limit_bytes=VMEM_LIMIT),
    )(*ins)
    if Mp != M:
        out = out[:M]
    return out


# ---------------------------------------------------------------------------
# Direct 3x3 stride-1 pad-1 conv kernel (no im2col in HBM).
# The whole NHWC image of one batch element stays resident in VMEM; at the
# first row-band of each image the zero-padded copy is built in a VMEM
# scratch, and every band accumulates 9 shifted taps into an f32 accumulator.
# ---------------------------------------------------------------------------
def _pick_th(Ho, Wo, cin, cout):
    cap = max(1, (1024 * 1024) // (Wo * max(cin, cout) * 4))
    cap = min(cap, max(1, 16384 // Wo))
    if Ho >= 16:
        cap = min(cap, Ho // 2)           # >=2 bands (helps v7x dual TC)
    cap = max(cap, 1)
    th = 1
    for d in range(1, Ho + 1):
        if Ho % d == 0 and d <= cap:
            th = d
    return th


def _conv3x3_kernel(Ho, Wo, TH, Cin, Cout, relu, has_res):
    def kernel(*refs):
        if has_res:
            x_ref, w_ref, s_ref, b_ref, r_ref, o_ref, buf_ref = refs
        else:
            x_ref, w_ref, s_ref, b_ref, o_ref, buf_ref = refs
            r_ref = None

        @pl.when(pl.program_id(1) == 0)
        def _fill_padded_image():
            buf_ref[...] = jnp.zeros_like(buf_ref)
            buf_ref[pl.ds(1, Ho), pl.ds(1, Wo), :] = x_ref[0]

        row0 = pl.program_id(1) * TH
        acc = jnp.zeros((TH * Wo, Cout), jnp.float32)
        for k in range(9):
            di, dj = k // 3, k % 3
            win = buf_ref[pl.ds(row0 + di, TH), pl.ds(dj, Wo), :]
            acc = acc + jnp.dot(win.reshape(TH * Wo, Cin), w_ref[k],
                                preferred_element_type=jnp.float32)

        y = acc.reshape(1, TH, Wo, Cout) * s_ref[0] + b_ref[0]
        if has_res:
            y = y + r_ref[...].astype(jnp.float32)
        if relu:
            y = jnp.maximum(y, 0.0)
        o_ref[...] = y.astype(o_ref.dtype)
    return kernel


@partial(jax.jit, static_argnames=("relu", "has_res", "out_f32"))
def _conv3x3_impl(x, w, scale, bias, res, relu, has_res, out_f32):
    # x: (N, Ho, Wo, Cin) NHWC ; w: (Cout, Cin, 3, 3) ; res: (N, Ho, Wo, Cout)
    N, Ho, Wo, Cin = x.shape
    Cout = w.shape[0]
    TH = _pick_th(Ho, Wo, Cin, Cout)
    nb = Ho // TH

    x = x.astype(COMPUTE_DTYPE)
    w9 = w.transpose(2, 3, 1, 0).reshape(9, Cin, Cout).astype(COMPUTE_DTYPE)
    scale = scale.reshape(1, Cout).astype(jnp.float32)
    bias = bias.reshape(1, Cout).astype(jnp.float32)

    ins = [x, w9, scale, bias]
    in_specs = [
        pl.BlockSpec((1, Ho, Wo, Cin), lambda n, t: (n, 0, 0, 0)),
        pl.BlockSpec((9, Cin, Cout), lambda n, t: (0, 0, 0)),
        pl.BlockSpec((1, Cout), lambda n, t: (0, 0)),
        pl.BlockSpec((1, Cout), lambda n, t: (0, 0)),
    ]
    if has_res:
        ins.append(res.astype(COMPUTE_DTYPE))
        in_specs.append(pl.BlockSpec((1, TH, Wo, Cout), lambda n, t: (n, t, 0, 0)))

    out_dtype = jnp.float32 if out_f32 else COMPUTE_DTYPE
    return pl.pallas_call(
        _conv3x3_kernel(Ho, Wo, TH, Cin, Cout, relu, has_res),
        out_shape=jax.ShapeDtypeStruct((N, Ho, Wo, Cout), out_dtype),
        grid=(N, nb),
        in_specs=in_specs,
        out_specs=pl.BlockSpec((1, TH, Wo, Cout), lambda n, t: (n, t, 0, 0)),
        scratch_shapes=[pltpu.VMEM((Ho + 2, Wo + 2, Cin), COMPUTE_DTYPE)],
        compiler_params=pltpu.CompilerParams(
            dimension_semantics=("parallel", "arbitrary"),
            vmem_limit_bytes=VMEM_LIMIT),
    )(*ins)


# ---------------------------------------------------------------------------
# GRU recurrence kernel: h stays resident in VMEM across the time grid axis.
#   gi : (T, BJ, 3H) f32 precomputed input-projection gates (r|z|n)
#   whh: (H, 3H) f32 (gh = h @ whh), bhh: (1, 3H) f32
# ---------------------------------------------------------------------------
def _gru_kernel(gi_ref, whh_ref, bhh_ref, h_ref, *, Hd):
    t = pl.program_id(0)

    @pl.when(t == 0)
    def _init():
        h_ref[...] = jnp.zeros_like(h_ref)

    h = h_ref[...]
    gi = gi_ref[0]                                              # (BJ, 3H)
    gh = jnp.dot(h, whh_ref[...],
                 preferred_element_type=jnp.float32) + bhh_ref[...]
    r = jax.nn.sigmoid(gi[:, :Hd] + gh[:, :Hd])
    z = jax.nn.sigmoid(gi[:, Hd:2 * Hd] + gh[:, Hd:2 * Hd])
    n = jnp.tanh(gi[:, 2 * Hd:] + r * gh[:, 2 * Hd:])
    h_ref[...] = (1.0 - z) * n + z * h


@partial(jax.jit, static_argnames=("BJ", "T"))
def _gru_impl(e_flat, w_ih, b_ih, w_hh, b_hh, BJ, T):
    Hd = w_hh.shape[0] // 3
    # Input projection for all (bj, t) rows in a single f32 GEMM.
    gi = matmul_fused(e_flat, w_ih.T, jnp.ones((3 * Hd,), jnp.float32), b_ih,
                      out_dtype=jnp.float32, compute_dtype=jnp.float32)
    gi = gi.reshape(BJ, T, 3 * Hd).transpose(1, 0, 2)           # (T, BJ, 3H)
    whh = w_hh.T.astype(jnp.float32)                            # (H, 3H)
    bhh = b_hh.reshape(1, 3 * Hd).astype(jnp.float32)

    h = pl.pallas_call(
        partial(_gru_kernel, Hd=Hd),
        out_shape=jax.ShapeDtypeStruct((BJ, Hd), jnp.float32),
        grid=(T,),
        in_specs=[pl.BlockSpec((1, BJ, 3 * Hd), lambda t: (t, 0, 0)),
                  pl.BlockSpec((Hd, 3 * Hd), lambda t: (0, 0)),
                  pl.BlockSpec((1, 3 * Hd), lambda t: (0, 0))],
        out_specs=pl.BlockSpec((BJ, Hd), lambda t: (0, 0)),
        compiler_params=pltpu.CompilerParams(
            dimension_semantics=("arbitrary",)),
    )(gi, whh, bhh)
    return h


def gru_forward(e_flat, gp, BJ, T):
    return _gru_impl(e_flat, gp["w_ih"], gp["b_ih"], gp["w_hh"], gp["b_hh"],
                     BJ=BJ, T=T)


# ---------------------------------------------------------------------------
# Conv / ConvTranspose / Linear wrappers (NHWC, jitted per configuration)
# ---------------------------------------------------------------------------
@partial(jax.jit, static_argnames=("stride", "padding", "relu", "has_res",
                                   "out_f32"))
def _conv_impl(x, w, scale, bias, res, stride, padding, relu, has_res,
               out_f32):
    # GEMM path: 1x1 convs and strided 3x3 convs (small im2col).
    N, H, W, Cin = x.shape
    Cout, _, kh, kw = w.shape
    if kh == 1 and kw == 1 and padding == 0:
        xs = x[:, ::stride, ::stride, :] if stride != 1 else x
        _, Ho, Wo, _ = xs.shape
        xm = xs.reshape(N * Ho * Wo, Cin)
        wm = w.reshape(Cout, Cin).T
    else:
        xp = jnp.pad(x, ((0, 0), (padding, padding), (padding, padding), (0, 0)))
        Hp, Wp = H + 2 * padding, W + 2 * padding
        Ho = (Hp - kh) // stride + 1
        Wo = (Wp - kw) // stride + 1
        cols = [xp[:, di:di + stride * (Ho - 1) + 1:stride,
                   dj:dj + stride * (Wo - 1) + 1:stride, :]
                for di in range(kh) for dj in range(kw)]
        xm = jnp.concatenate(cols, axis=-1).reshape(N * Ho * Wo, kh * kw * Cin)
        wm = w.transpose(2, 3, 1, 0).reshape(kh * kw * Cin, Cout)

    rm = res.reshape(N * Ho * Wo, Cout) if has_res else None
    out_dtype = jnp.float32 if out_f32 else COMPUTE_DTYPE
    om = matmul_fused(xm, wm, scale, bias, res=rm, relu=relu,
                      out_dtype=out_dtype)
    return om.reshape(N, Ho, Wo, Cout)


def conv2d(x, w, scale, bias, stride=1, padding=0, relu=False, res=None,
           out_f32=False):
    Cout, Cin, kh, kw = w.shape
    direct = (kh == 3 and kw == 3 and stride == 1 and padding == 1
              and x.shape[2] % 8 == 0 and Cin % 8 == 0 and Cout % 8 == 0)
    if direct:
        if res is None:
            dummy = jnp.zeros((1, 1, 1, 1), COMPUTE_DTYPE)
            return _conv3x3_impl(x, w, scale, bias, dummy, relu=relu,
                                 has_res=False, out_f32=out_f32)
        return _conv3x3_impl(x, w, scale, bias, res, relu=relu,
                             has_res=True, out_f32=out_f32)
    if res is None:
        dummy = jnp.zeros((1, 1, 1, 1), COMPUTE_DTYPE)
        return _conv_impl(x, w, scale, bias, dummy, stride=stride,
                          padding=padding, relu=relu, has_res=False,
                          out_f32=out_f32)
    return _conv_impl(x, w, scale, bias, res, stride=stride, padding=padding,
                      relu=relu, has_res=True, out_f32=out_f32)


def conv_unit(x, u, stride=1, padding=0, relu=False, res=None, out_f32=False):
    return conv2d(x, u["w"], u["s"], u["b"], stride=stride, padding=padding,
                  relu=relu, res=res, out_f32=out_f32)


@partial(jax.jit, static_argnames=("relu",))
def _deconv_impl(x, w, scale, bias, relu):
    # ConvTranspose2d k=2 s=2 (bias=False) as ONE GEMM with 4*Cout columns.
    N, H, W, Cin = x.shape
    Cout = w.shape[1]
    wm = w.transpose(0, 2, 3, 1).reshape(Cin, 4 * Cout)   # cols = (di, dj, cout)
    s4 = jnp.tile(scale.reshape(-1), 4)
    b4 = jnp.tile(bias.reshape(-1), 4)
    om = matmul_fused(x.reshape(N * H * W, Cin), wm, s4, b4, relu=relu)
    o = om.reshape(N, H, W, 2, 2, Cout).transpose(0, 1, 3, 2, 4, 5)
    return o.reshape(N, 2 * H, 2 * W, Cout)


def deconv2x2(x, u, relu=True):
    return _deconv_impl(x, u["w"], u["s"], u["b"], relu=relu)


@partial(jax.jit, static_argnames=("relu", "out_f32", "f32_compute"))
def _linear_impl(x, w, b, relu, out_f32, f32_compute):
    cout = w.shape[0]
    return matmul_fused(
        x, w.T, jnp.ones((cout,), jnp.float32), b, relu=relu,
        out_dtype=jnp.float32 if out_f32 else COMPUTE_DTYPE,
        compute_dtype=jnp.float32 if f32_compute else COMPUTE_DTYPE)


def linear(x, lp, relu=False, out_f32=False, f32_compute=False):
    return _linear_impl(x, lp["w"], lp["b"], relu=relu, out_f32=out_f32,
                        f32_compute=f32_compute)


def upsample_nearest(x, s):
    s = int(s)
    return jnp.repeat(jnp.repeat(x, s, axis=1), s, axis=2)


# ---------------------------------------------------------------------------
# Deterministic parameter initialization (BN folded to scale/bias up front)
# ---------------------------------------------------------------------------
class PInit:
    def __init__(self, seed=0):
        self.key = jax.random.PRNGKey(seed)

    def nk(self):
        self.key, k = jax.random.split(self.key)
        return k

    def conv_w(self, cout, cin, kh, kw):
        fan = cin * kh * kw
        return jax.random.normal(self.nk(), (cout, cin, kh, kw),
                                 jnp.float32) * (0.5 / math.sqrt(fan))

    def convT_w(self, cin, cout, kh, kw):
        fan = cin * kh * kw
        return jax.random.normal(self.nk(), (cin, cout, kh, kw),
                                 jnp.float32) * (0.5 / math.sqrt(fan))

    def vec(self, n, s=0.05):
        return s * jax.random.normal(self.nk(), (n,), jnp.float32)

    def bn_fold(self, cch, conv_bias=None, eps=1e-5):
        gamma = 1.0 + 0.1 * jax.random.normal(self.nk(), (cch,), jnp.float32)
        beta = 0.1 * jax.random.normal(self.nk(), (cch,), jnp.float32)
        mean = jnp.zeros((cch,), jnp.float32)
        var = jnp.ones((cch,), jnp.float32)
        scale = gamma / jnp.sqrt(var + eps)
        cb = conv_bias if conv_bias is not None else 0.0
        return scale, (cb - mean) * scale + beta

    def convbn(self, cout, cin, kh, kw):
        s, b = self.bn_fold(cout)
        return {"w": self.conv_w(cout, cin, kh, kw), "s": s, "b": b}

    def convbias(self, cout, cin, kh, kw):
        return {"w": self.conv_w(cout, cin, kh, kw),
                "s": jnp.ones((cout,), jnp.float32), "b": self.vec(cout)}

    def conv_bias_bn(self, cout, cin, kh, kw):
        w = self.conv_w(cout, cin, kh, kw)
        cb = self.vec(cout)
        s, b = self.bn_fold(cout, conv_bias=cb)
        return {"w": w, "s": s, "b": b}

    def deconvbn(self, cin, cout):
        s, b = self.bn_fold(cout)
        return {"w": self.convT_w(cin, cout, 2, 2), "s": s, "b": b}

    def linear(self, cin, cout):
        return {"w": jax.random.normal(self.nk(), (cout, cin), jnp.float32)
                * (0.5 / math.sqrt(cin)),
                "b": self.vec(cout)}

    def gru(self, inp, H):
        return {"w_ih": 0.05 * jax.random.normal(self.nk(), (3 * H, inp), jnp.float32),
                "w_hh": 0.05 * jax.random.normal(self.nk(), (3 * H, H), jnp.float32),
                "b_ih": self.vec(3 * H), "b_hh": self.vec(3 * H)}


def make_basic_block(pi, ch):
    return {"c1": pi.convbn(ch, ch, 3, 3), "c2": pi.convbn(ch, ch, 3, 3)}


def make_bottleneck(pi, inp, planes, downsample=False):
    p = {"c1": pi.convbn(planes, inp, 1, 1),
         "c2": pi.convbn(planes, planes, 3, 3),
         "c3": pi.convbn(planes * 4, planes, 1, 1)}
    if downsample:
        p["ds"] = pi.convbn(planes * 4, inp, 1, 1)
    return p


def make_stage_module(pi, stage, output_branches, c):
    branches = [[make_basic_block(pi, c * 2 ** i) for _ in range(4)]
                for i in range(stage)]
    fuse = []
    for i in range(output_branches):
        row = []
        for j in range(stage):
            if i == j:
                row.append(None)
            elif i < j:
                row.append({"type": "up",
                            "cb": pi.convbn(c * 2 ** i, c * 2 ** j, 1, 1),
                            "scale": 2 ** (j - i)})
            else:
                ops = []
                for _ in range(i - j - 1):
                    ops.append({"cb": pi.convbn(c * 2 ** j, c * 2 ** j, 3, 3),
                                "relu": True})
                ops.append({"cb": pi.convbn(c * 2 ** i, c * 2 ** j, 3, 3),
                            "relu": False})
                row.append({"type": "down", "ops": ops})
        fuse.append(row)
    return {"branches": branches, "fuse": fuse}


def make_hrnet(pi, c):
    p = {"conv1": pi.convbn(64, 3, 3, 3), "conv2": pi.convbn(64, 64, 3, 3)}
    p["layer1"] = [make_bottleneck(pi, 64, 64, downsample=True)] + \
                  [make_bottleneck(pi, 256, 64) for _ in range(3)]
    p["t1_0"] = pi.convbn(c, 256, 3, 3)
    p["t1_1"] = pi.convbn(2 * c, 256, 3, 3)
    p["stage2"] = [make_stage_module(pi, 2, 2, c)]
    p["t2_2"] = pi.convbn(4 * c, 2 * c, 3, 3)
    p["stage3"] = [make_stage_module(pi, 3, 3, c) for _ in range(4)]
    p["t3_3"] = pi.convbn(8 * c, 4 * c, 3, 3)
    p["stage4"] = [make_stage_module(pi, 4, 4, c),
                   make_stage_module(pi, 4, 4, c),
                   make_stage_module(pi, 4, 1, c)]
    return p


def make_dspdh(pi, c=8, J=16, fut=2, local_emb=16, controller=288):
    p = {"backbone": make_hrnet(pi, c)}
    p["emb1"] = pi.linear(3, local_emb // 2)
    p["emb2"] = pi.linear(local_emb // 2, local_emb)
    p["gru"] = pi.gru(local_emb, controller)
    p["deconv_temp"] = [{"ct": pi.deconvbn(J, J),
                         "blocks": [make_basic_block(pi, J)]} for _ in range(2)]
    branch = c + J

    def head_deconv():
        layers, inp = [], branch
        for _ in range(2):
            layers.append({"ct": pi.deconvbn(inp + J, c),
                           "blocks": [make_basic_block(pi, c) for _ in range(2)]})
            inp = c
        return layers

    def finals():
        return [pi.convbias(J, branch, 1, 1)] + \
               [pi.convbias(J, c, 1, 1) for _ in range(2)]

    def fut_head():
        return {"c1": pi.conv_bias_bn(J * fut, branch, 3, 3),
                "c2": pi.convbias(J * fut, J * fut, 3, 3)}

    p["uv_deconv"], p["uz_deconv"] = head_deconv(), head_deconv()
    p["uv_final"], p["uz_final"] = finals(), finals()
    p["uv_fut"], p["uz_fut"] = fut_head(), fut_head()
    return p


# ---------------------------------------------------------------------------
# Forward passes (activations are NHWC bf16; fuse sums / maps in f32)
# ---------------------------------------------------------------------------
def basic_block_fwd(x, p):
    y = conv_unit(x, p["c1"], padding=1, relu=True)
    return conv_unit(y, p["c2"], padding=1, relu=True, res=x)


def bottleneck_fwd(x, p):
    ident = conv_unit(x, p["ds"]) if "ds" in p else x
    y = conv_unit(x, p["c1"], relu=True)
    y = conv_unit(y, p["c2"], padding=1, relu=True)
    return conv_unit(y, p["c3"], relu=True, res=ident)


def stage_module_fwd(xs, p):
    assert len(p["branches"]) == len(xs)
    outs = []
    for i, blocks in enumerate(p["branches"]):
        xi = xs[i]
        for bb in blocks:
            xi = basic_block_fwd(xi, bb)
        outs.append(xi)
    fused = []
    for row in p["fuse"]:
        acc = None
        for j, f in enumerate(row):
            if f is None:
                y = outs[j].astype(jnp.float32)
            elif f["type"] == "up":
                y = conv_unit(outs[j], f["cb"], out_f32=True)
                y = upsample_nearest(y, f["scale"])
            else:
                y = outs[j]
                n_ops = len(f["ops"])
                for k, op in enumerate(f["ops"]):
                    y = conv_unit(y, op["cb"], stride=2, padding=1,
                                  relu=op["relu"], out_f32=(k == n_ops - 1))
            acc = y if acc is None else acc + y
        fused.append(jax.nn.relu(acc).astype(COMPUTE_DTYPE))
    return fused


def hrnet_fwd(x, p):
    x = conv_unit(x, p["conv1"], stride=2, padding=1, relu=True)
    x = conv_unit(x, p["conv2"], stride=2, padding=1, relu=True)
    for blk in p["layer1"]:
        x = bottleneck_fwd(x, blk)
    x0 = conv_unit(x, p["t1_0"], padding=1, relu=True)
    x1 = conv_unit(x, p["t1_1"], stride=2, padding=1, relu=True)
    xs = [x0, x1]
    for sm in p["stage2"]:
        xs = stage_module_fwd(xs, sm)
    x2 = conv_unit(xs[-1], p["t2_2"], stride=2, padding=1, relu=True)
    xs = [xs[0], xs[1], x2]
    for sm in p["stage3"]:
        xs = stage_module_fwd(xs, sm)
    x3 = conv_unit(xs[-1], p["t3_3"], stride=2, padding=1, relu=True)
    xs = [xs[0], xs[1], xs[2], x3]
    for sm in p["stage4"]:
        xs = stage_module_fwd(xs, sm)
    return xs


def _fuse_units(a, b):
    """Concatenate two conv units with identical input along output channels."""
    return (jnp.concatenate([a["w"], b["w"]], axis=0),
            jnp.concatenate([a["s"], b["s"]]),
            jnp.concatenate([a["b"], b["b"]]))


def dspdh_fwd(x, x_temp, p, c=8, J=16, fut=2):
    # NCHW module boundary -> NHWC bf16 internal layout
    x = jnp.transpose(x, (0, 2, 3, 1)).astype(COMPUTE_DTYPE)
    feats = hrnet_fwd(x, p["backbone"])[0]                 # (B, 48, 96, c)
    B, T = x_temp.shape[0], x_temp.shape[1]

    # temporal branch (temporal_type == 'local', deltas == False) -- kept f32
    xt = x_temp.transpose(0, 2, 1, 3).reshape(-1, 3)       # rows ordered (b, j, t)
    e = linear(xt, p["emb1"], relu=True, out_f32=True, f32_compute=True)
    e = linear(e, p["emb2"], relu=False, out_f32=True, f32_compute=True)
    h = gru_forward(e, p["gru"], BJ=B * J, T=T)            # (B*J, 288) f32
    x_joint = h.reshape(B, J, 12, 24).transpose(0, 2, 3, 1).astype(COMPUTE_DTYPE)

    for dl in p["deconv_temp"]:
        x_joint = deconv2x2(x_joint, dl["ct"], relu=True)
        for bb in dl["blocks"]:
            x_joint = basic_block_fwd(x_joint, bb)         # -> (B, 48, 96, J)

    uv_x = jnp.concatenate([feats, x_joint], axis=-1)      # (B, 48, 96, c+J)
    uz_x = uv_x

    # future heads: first 3x3 convs of uv/uz fused (same input, lane-denser)
    Cf = J * fut
    w1, s1, b1 = _fuse_units(p["uv_fut"]["c1"], p["uz_fut"]["c1"])
    yf = conv2d(uv_x, w1, s1, b1, padding=1, relu=True)    # (B, 48, 96, 2*Cf)
    fut_uv = conv_unit(yf[..., :Cf], p["uv_fut"]["c2"], padding=1, out_f32=True)
    fut_uz = conv_unit(yf[..., Cf:], p["uz_fut"]["c2"], padding=1, out_f32=True)

    # first 1x1 final convs of uv/uz fused (same input)
    wf, sf, bf = _fuse_units(p["uv_final"][0], p["uz_final"][0])
    y0 = conv2d(uv_x, wf, sf, bf)                          # (B, 48, 96, 2*J)
    uv_y, uz_y = y0[..., :J], y0[..., J:]

    def deconv_stage(xin, dp):
        y = deconv2x2(xin, dp["ct"], relu=True)
        for bb in dp["blocks"]:
            y = basic_block_fwd(y, bb)
        return y

    uv_map = uz_map = None
    for i in range(2):
        uv_x = jnp.concatenate([uv_x, uv_y], axis=-1)
        uz_x = jnp.concatenate([uz_x, uz_y], axis=-1)
        uv_x = deconv_stage(uv_x, p["uv_deconv"][i])
        uz_x = deconv_stage(uz_x, p["uz_deconv"][i])
        if i < 1:
            uv_y = conv_unit(uv_x, p["uv_final"][i + 1])
            uz_y = conv_unit(uz_x, p["uz_final"][i + 1])
        else:
            uv_map = conv_unit(uv_x, p["uv_final"][i + 1], out_f32=True)
            uz_map = conv_unit(uz_x, p["uz_final"][i + 1], out_f32=True)

    uvz = jnp.concatenate([uv_map, uz_map], axis=-1).transpose(0, 3, 1, 2)
    futm = jnp.concatenate([fut_uv, fut_uz], axis=-1).transpose(0, 3, 1, 2)
    return uvz, futm


# ---------------------------------------------------------------------------
if __name__ == "__main__":
    # Small but semantics-consistent configuration:
    #   c=8 (HRNet width), joints_num=16, future_window_size=2, T=4, B=1.
    # The image spatial size 192x384 is forced by the module's hard-coded
    # (12, 24) GRU-state reshape and the x4 backbone downsampling.
    B, c, J, fut, T = 1, 8, 16, 2, 4

    pi = PInit(seed=0)
    params = make_dspdh(pi, c=c, J=J, fut=fut)

    key = jax.random.PRNGKey(0)
    k1, k2 = jax.random.split(key)
    x = jax.random.normal(k1, (B, 3, 192, 384), jnp.float32)
    x_temp = jax.random.normal(k2, (B, T, J, 3), jnp.float32)

    uvz_map, fut_map = dspdh_fwd(x, x_temp, params, c=c, J=J, fut=fut)
    jax.block_until_ready((uvz_map, fut_map))

    assert uvz_map.shape == (B, 2 * J, 192, 384), uvz_map.shape
    assert fut_map.shape == (B, 2 * J * fut, 48, 96), fut_map.shape
    assert bool(jnp.all(jnp.isfinite(uvz_map))) and bool(jnp.all(jnp.isfinite(fut_map)))
    print("KERNEL_OK")
</pallas_src>

<mosaic_0001>
module attributes {stable_mosaic.version = 11 : i64} {
  func.func @kernel(%arg0: i32, %arg1: memref<512x27xbf16, #tpu.memory_space<vmem>>, %arg2: memref<27x64xbf16, #tpu.memory_space<vmem>>, %arg3: memref<1x64xf32, #tpu.memory_space<vmem>>, %arg4: memref<1x64xf32, #tpu.memory_space<vmem>>, %arg5: memref<512x64xbf16, #tpu.memory_space<vmem>>) attributes {dimension_semantics = [#tpu.dimension_semantics<parallel>], iteration_bounds = array<i64: 36>, scalar_prefetch = 0 : i64, scratch_operands = 0 : i64, tpu.core_type = #tpu.core_type<tc>, window_params = [{transform_indices = @transform_0, window_bounds = array<i64: 512, 27>}, {pipeline_mode = #tpu.pipeline_mode<synchronous>, transform_indices = @transform_1, window_bounds = array<i64: 27, 64>}, {pipeline_mode = #tpu.pipeline_mode<synchronous>, transform_indices = @transform_2, window_bounds = array<i64: 1, 64>}, {pipeline_mode = #tpu.pipeline_mode<synchronous>, transform_indices = @transform_3, window_bounds = array<i64: 1, 64>}, {transform_indices = @transform_4, window_bounds = array<i64: 512, 64>}]} {
    %c0 = arith.constant 0 : index
    %c0_0 = arith.constant 0 : index
    %0 = vector.load %arg1[%c0, %c0_0] : memref<512x27xbf16, #tpu.memory_space<vmem>>, vector<512x27xbf16>
    %c0_1 = arith.constant 0 : index
    %c0_2 = arith.constant 0 : index
    %1 = vector.load %arg2[%c0_1, %c0_2] : memref<27x64xbf16, #tpu.memory_space<vmem>>, vector<27x64xbf16>
    %cst = arith.constant dense<0.000000e+00> : vector<512x64xf32>
    %2 = tpu.matmul %0, %1, %cst {dimension_numbers = #tpu.dot_dimension_numbers<[1], [0], [0], [1], [0, 0, 1, 1], [], []>} : vector<512x27xbf16>, vector<27x64xbf16>, vector<512x64xf32> -> vector<512x64xf32>
    %c0_3 = arith.constant 0 : index
    %c0_4 = arith.constant 0 : index
    %3 = vector.load %arg3[%c0_3, %c0_4] : memref<1x64xf32, #tpu.memory_space<vmem>>, vector<1x64xf32>
    %4 = vector.broadcast %3 : vector<1x64xf32> to vector<512x64xf32>
    %5 = arith.mulf %2, %4 : vector<512x64xf32>
    %c0_5 = arith.constant 0 : index
    %c0_6 = arith.constant 0 : index
    %6 = vector.load %arg4[%c0_5, %c0_6] : memref<1x64xf32, #tpu.memory_space<vmem>>, vector<1x64xf32>
    %7 = vector.broadcast %6 : vector<1x64xf32> to vector<512x64xf32>
    %8 = arith.addf %5, %7 : vector<512x64xf32>
    %cst_7 = arith.constant 0.000000e+00 : f32
    %9 = vector.broadcast %cst_7 : f32 to vector<512x64xf32>
    %10 = arith.maximumf %8, %9 : vector<512x64xf32>
    %11 = arith.truncf %10 : vector<512x64xf32> to vector<512x64xbf16>
    %c0_8 = arith.constant 0 : index
    %c0_9 = arith.constant 0 : index
    %12 = vector.load %arg5[%c0_8, %c0_9] : memref<512x64xbf16, #tpu.memory_space<vmem>>, vector<512x64xbf16>
    tpu.vector_store %arg5[%c0_8, %c0_9], %11 {strides = array<i32>} : memref<512x64xbf16, #tpu.memory_space<vmem>>, vector<512x64xbf16>,
    return
  }
  func.func @transform_0(%arg0: i32) -> (i32, i32) {
    %c0_i32 = arith.constant 0 : i32
    %c0_i32_0 = arith.constant 0 : i32
    return %arg0, %c0_i32 : i32, i32
  }
  func.func @transform_1(%arg0: i32) -> (i32, i32) {
    %c0_i32 = arith.constant 0 : i32
    %c0_i32_0 = arith.constant 0 : i32
    %c0_i32_1 = arith.constant 0 : i32
    return %c0_i32, %c0_i32_0 : i32, i32
  }
  func.func @transform_2(%arg0: i32) -> (i32, i32) {
    %c0_i32 = arith.constant 0 : i32
    %c0_i32_0 = arith.constant 0 : i32
    %c0_i32_1 = arith.constant 0 : i32
    return %c0_i32, %c0_i32_0 : i32, i32
  }
  func.func @transform_3(%arg0: i32) -> (i32, i32) {
    %c0_i32 = arith.constant 0 : i32
    %c0_i32_0 = arith.constant 0 : i32
    %c0_i32_1 = arith.constant 0 : i32
    return %c0_i32, %c0_i32_0 : i32, i32
  }
  func.func @transform_4(%arg0: i32) -> (i32, i32) {
    %c0_i32 = arith.constant 0 : i32
    %c0_i32_0 = arith.constant 0 : i32
    return %arg0, %c0_i32 : i32, i32
  }
}

</mosaic_0001>

<bundles_post_ra>
// kernel: _conv_impl.1
= control target key start
LH: loop header
LB: loop body
LE: loop exit
PB: predicated region body
PF: predicated region fallthrough
CT: control target
= control target key end

     0   :  { %s1807_s15 = smov 0   ;;  %s2171_s0 = inlined_call_operand.vmem [shape: bf16[18432,27], index: 0, kind: input, shape index: {}]   ;;  %s2172_s1 = inlined_call_operand.vmem [shape: bf16[27,64], index: 1, kind: input, shape index: {}]   ;;  %s2173_s2 = inlined_call_operand.vmem [shape: f32[1,64], index: 2, kind: input, shape index: {}]   ;;  %s2174_s3 = inlined_call_operand.vmem [shape: f32[1,64], index: 3, kind: input, shape index: {}]   ;;  %s2175_s4 = inlined_call_operand.vmem [shape: bf16[18432,64], index: 4, kind: output, shape index: {}]  }
   0x1 LB: > { %s1417_s16 = sadd.s32 4294967295, %s1779_s15   ;;  %p1421_p0 = scmp.ge.s32.totalorder %s1779_s15, 1  ;;  %s1779_s15 = sphi %s1807_s15, %s14_s15  }
   0x2   : > { %p163_p1 = scmp.lt.s32.totalorder %s1779_s15, 37 }
   0x4   : > { %p164_p2 = pnand %p1421_p0, %p163_p1 }
   0x5   : > { %s1422_s19 = sshll.u32 (!%p164_p2), %s1417_s16, 6 }
   0x6   : > { %167 = sbr.rel (%p164_p2) target bundleno = 293 (0x125), region = 36  ;;  %p190_p3 = scmp.lt.s32.totalorder (!%p164_p2), %s1422_s19, 2303 }
   0xb   : > { %v1739_v0 = vld [vmem:[%s2172_s1 + $0x8] sm:$0x3f]   ;;  %vm538_vm0 = vcmask 1044480   ;;  %vm539_vm1 = vcmask 1045504   ;;  %v1781_v1 = vmov 65535   ;;  %v1740_v5 = vld [vmem:[%s2172_s1] sm:$0xff]  }
   0xc   : > { %v540_v2 = vsel %vm538_vm0, 4294967295, %v1781_v1  ;;  %s2177_s19 = smov (!%p190_p3, %s1422_s19), 2303  ;;  %vm441_vm2 = vcmask 220160   ;;  %v1898_v38 = vld [vmem:[%s2173_s2] ss:$0 sm:$0xff]  ;;  %vm1296_vm3 = vcmask 519168  }
   0xd   : > { %v541_v3 = vsel %vm539_vm1, %v540_v2, 0  ;;  %s1423_s22 = sshll.u32 %s2177_s19, 2  ;;  %v1903_v40 = vld [vmem:[%s2174_s3] ss:$0 sm:$0xff] }
   0xe   : > { %v543_v4 = vand.u32 %v1739_v0, %v541_v3  ;;  %s1829_s25 = scalar_lea.vmem %s2171_s0, %s1423_s22  ;;  %s1918_s6 = scalar_lea.vmem %s2175_s4, %s1423_s22 }
   0xf   : > { %v1741_v6 = vld [vmem:[%s1829_s25] sm:$0xff]   ;;  %v1743_v8 = vld [vmem:[%s1829_s25 + $0x8] sm:$0xff]   ;;  %v1745_v10 = vld [vmem:[%s1829_s25 + $0x10] sm:$0xff]  }
  0x10   : > { %1658 = vmatprep.subr.bf16.mxu0 %v543_v4  ;;  %1726 = vmatprep.subr.bf16.mxu1 %v543_v4  ;;  %v1742_v7 = vld [vmem:[%s1829_s25 + $0x80] sm:$0xff]   ;;  %v1744_v9 = vld [vmem:[%s1829_s25 + $0x88] sm:$0xff]   ;;  %v1746_v11 = vld [vmem:[%s1829_s25 + $0x90] sm:$0xff]  }
  0x11   : > { %1659 = vmatpush3.bf16.msra.mxu0 %v543_v4  ;;  %1728 = vmatpush3.bf16.msra.mxu1 %v543_v4  ;;  %v1747_v12 = vld [vmem:[%s1829_s25 + $0x18] sm:$0xff]   ;;  %v1749_v14 = vld [vmem:[%s1829_s25 + $0x20] sm:$0xff]   ;;  %v1751_v16 = vld [vmem:[%s1829_s25 + $0x28] sm:$0xff]  }
  0x12   : > { %1660 = vmatprep.subr.bf16.mxu0 %v1740_v5  ;;  %1727 = vmatprep.subr.bf16.mxu1 %v1740_v5  ;;  %v1748_v13 = vld [vmem:[%s1829_s25 + $0x98] sm:$0xff]   ;;  %v1750_v15 = vld [vmem:[%s1829_s25 + $0xa0] sm:$0xff]   ;;  %v1752_v17 = vld [vmem:[%s1829_s25 + $0xa8] sm:$0xff]  }
  0x13   : > { %1662 = vmatprep.mubr.msk.bf16.mxu0 %vm441_vm2, %v1741_v6  ;;  %1694 = vmatprep.mubr.msk.bf16.mxu1 %vm441_vm2, %v1742_v7  ;;  %v1753_v18 = vld [vmem:[%s1829_s25 + $0x30] sm:$0xff]   ;;  %v1755_v20 = vld [vmem:[%s1829_s25 + $0x38] sm:$0xff]   ;;  %v1757_v22 = vld [vmem:[%s1829_s25 + $0x40] sm:$0xff]  }
  0x14   : > { %v1754_v19 = vld [vmem:[%s1829_s25 + $0xb0] sm:$0xff]   ;;  %v1756_v21 = vld [vmem:[%s1829_s25 + $0xb8] sm:$0xff]   ;;  %v1758_v23 = vld [vmem:[%s1829_s25 + $0xc0] sm:$0xff]  }
  0x15   : > { %1661 = vmatpush3.bf16.msra.mxu0 %v1740_v5  ;;  %1729 = vmatpush3.bf16.msra.mxu1 %v1740_v5  ;;  %v1759_v24 = vld [vmem:[%s1829_s25 + $0x48] sm:$0xff]   ;;  %v1761_v26 = vld [vmem:[%s1829_s25 + $0x50] sm:$0xff]   ;;  %v1763_v28 = vld [vmem:[%s1829_s25 + $0x58] sm:$0xff]  }
  0x16   : > { %v1760_v25 = vld [vmem:[%s1829_s25 + $0xc8] sm:$0xff]   ;;  %v1762_v27 = vld [vmem:[%s1829_s25 + $0xd0] sm:$0xff]   ;;  %v1764_v29 = vld [vmem:[%s1829_s25 + $0xd8] sm:$0xff]  }
  0x17   : > { %v1765_v30 = vld [vmem:[%s1829_s25 + $0x60] sm:$0xff]   ;;  %v1767_v32 = vld [vmem:[%s1829_s25 + $0x68] sm:$0xff]   ;;  %v1769_v34 = vld [vmem:[%s1829_s25 + $0x70] sm:$0xff]  }
  0x18   : > { %1663 = vmatmul.mubr.msk.bf16.vlgmr.msra.gmra.mxu0 %vm441_vm2, %v1743_v8  ;;  %1695 = vmatmul.mubr.msk.bf16.vlgmr.msra.gmra.mxu1 %vm441_vm2, %v1744_v9  ;;  %v1766_v31 = vld [vmem:[%s1829_s25 + $0xe0] sm:$0xff]   ;;  %v1768_v33 = vld [vmem:[%s1829_s25 + $0xe8] sm:$0xff]   ;;  %v1770_v35 = vld [vmem:[%s1829_s25 + $0xf0] sm:$0xff]  }
  0x19   : > { %1666 = vmatprep.mubr.msk.bf16.mxu0 %vm441_vm2, %v1745_v10  ;;  %1698 = vmatprep.mubr.msk.bf16.mxu1 %vm441_vm2, %v1746_v11  ;;  %v1771_v36 = vld [vmem:[%s1829_s25 + $0x78] sm:$0xff]  }
  0x1a   : > { %v1772_v37 = vld [vmem:[%s1829_s25 + $0xf8] sm:$0xff]  }
  0x20   : > { %1667 = vmatmul.mubr.msk.bf16.gmra.mxu0 %vm441_vm2, %v1747_v12  ;;  %1699 = vmatmul.mubr.msk.bf16.gmra.mxu1 %vm441_vm2, %v1748_v13 }
  0x21   : > { %1670 = vmatprep.mubr.msk.bf16.mxu0 %vm441_vm2, %v1749_v14  ;;  %1702 = vmatprep.mubr.msk.bf16.mxu1 %vm441_vm2, %v1750_v15 }
  0x28   : > { %1671 = vmatmul.mubr.msk.bf16.gmra.mxu0 %vm441_vm2, %v1751_v16  ;;  %1703 = vmatmul.mubr.msk.bf16.gmra.mxu1 %vm441_vm2, %v1752_v17 }
  0x29   : > { %1674 = vmatprep.mubr.msk.bf16.mxu0 %vm441_vm2, %v1753_v18  ;;  %1706 = vmatprep.mubr.msk.bf16.mxu1 %vm441_vm2, %v1754_v19 }
  0x30   : > { %1675 = vmatmul.mubr.msk.bf16.gmra.mxu0 %vm441_vm2, %v1755_v20  ;;  %1707 = vmatmul.mubr.msk.bf16.gmra.mxu1 %vm441_vm2, %v1756_v21 }
  0x31   : > { %1678 = vmatprep.mubr.msk.bf16.mxu0 %vm441_vm2, %v1757_v22  ;;  %1710 = vmatprep.mubr.msk.bf16.mxu1 %vm441_vm2, %v1758_v23 }
  0x38   : > { %1679 = vmatmul.mubr.msk.bf16.gmra.mxu0 %vm441_vm2, %v1759_v24  ;;  %1711 = vmatmul.mubr.msk.bf16.gmra.mxu1 %vm441_vm2, %v1760_v25 }
  0x39   : > { %1682 = vmatprep.mubr.msk.bf16.mxu0 %vm441_vm2, %v1761_v26  ;;  %1714 = vmatprep.mubr.msk.bf16.mxu1 %vm441_vm2, %v1762_v27 }
  0x40   : > { %1683 = vmatmul.mubr.msk.bf16.gmra.mxu0 %vm441_vm2, %v1763_v28  ;;  %1715 = vmatmul.mubr.msk.bf16.gmra.mxu1 %vm441_vm2, %v1764_v29 }
  0x41   : > { %1686 = vmatprep.mubr.msk.bf16.mxu0 %vm441_vm2, %v1765_v30  ;;  %1718 = vmatprep.mubr.msk.bf16.mxu1 %vm441_vm2, %v1766_v31 }
  0x48   : > { %1687 = vmatmul.mubr.msk.bf16.gmra.mxu0 %vm441_vm2, %v1767_v32  ;;  %1719 = vmatmul.mubr.msk.bf16.gmra.mxu1 %vm441_vm2, %v1768_v33 }
  0x49   : > { %1690 = vmatprep.mubr.msk.bf16.mxu0 %vm441_vm2, %v1769_v34  ;;  %1722 = vmatprep.mubr.msk.bf16.mxu1 %vm441_vm2, %v1770_v35 }
  0x50   : > { %1691 = vmatmul.mubr.msk.bf16.gmra.mxu0 %vm441_vm2, %v1771_v36  ;;  %1723 = vmatmul.mubr.msk.bf16.gmra.mxu1 %vm441_vm2, %v1772_v37 }
  0xd8   : > { %v1664_v39 = vpop.f32.mrf.mxu0  ;;  %v1696_v41 = vpop.f32.mrf.mxu1 }
  0xd9   : > { %v843_v42 = vmul.f32 %v1664_v39, %v1898_v38  ;;  %v875_v43 = vmul.f32 %v1696_v41, %v1898_v38 }
  0xda   : > { %v579_v44 = vpop.f32.mrf.mxu0  ;;  %v707_v45 = vpop.f32.mrf.mxu1 }
  0xdb   : > { %v914_v46 = vadd.f32 %v1903_v40, %v843_v42  ;;  %v946_v47 = vadd.f32 %v1903_v40, %v875_v43  ;;  %v841_v48 = vmul.f32 %v1898_v38, %v579_v44  ;;  %v873_v49 = vmul.f32 %v1898_v38, %v707_v45 }
  0xdc   : > { %v1665_v50 = vpop.f32.mrf.mxu0  ;;  %v1697_v51 = vpop.f32.mrf.mxu1 }
  0xdd   : > { %v978_v52 = vmax.f32 %v914_v46, 0.0  ;;  %v1010_v53 = vmax.f32 %v946_v47, 0.0  ;;  %v912_v54 = vadd.f32 %v1903_v40, %v841_v48  ;;  %v944_v55 = vadd.f32 %v1903_v40, %v873_v49 }
  0xde   : > { %v844_v56 = vmul.f32 %v1665_v50, %v1898_v38  ;;  %v876_v57 = vmul.f32 %v1697_v51, %v1898_v38  ;;  %v582_v58 = vpop.f32.mrf.mxu0  ;;  %v710_v59 = vpop.f32.mrf.mxu1 }
  0xdf   : > { %v1562_v60 = vpack.c.bf16 %v978_v52, %v978_v52  ;;  %v1594_v61 = vpack.c.bf16 %v1010_v53, %v1010_v53  ;;  %v976_v62 = vmax.f32 %v912_v54, 0.0  ;;  %v1008_v63 = vmax.f32 %v944_v55, 0.0 }
  0xe0   : > { %v915_v0 = vadd.f32 %v1903_v40, %v844_v56  ;;  %v947_v1 = vadd.f32 %v1903_v40, %v876_v57  ;;  %v842_v2 = vmul.f32 %v1898_v38, %v582_v58  ;;  %v874_v3 = vmul.f32 %v1898_v38, %v710_v59  ;;  %v1668_v4 = vpop.f32.mrf.mxu0  ;;  %v1700_v5 = vpop.f32.mrf.mxu1 }
  0xe1   : > { %1299 = vst.msk [vmem:[%s1918_s6 + $0x8] sm:$0xf] %vm1296_vm3, %v1562_v60  ;;  %1331 = vst.msk [vmem:[%s1918_s6 + $0x88] sm:$0xf] %vm1296_vm3, %v1594_v61  ;;  %v1560_v6 = vpack.c.bf16 %v976_v62, %v976_v62  ;;  %v1592_v7 = vpack.c.bf16 %v1008_v63, %v1008_v63  ;;  %v847_v8 = vmul.f32 %v1668_v4, %v1898_v38 }
  0xe2   : > { %v879_v9 = vmul.f32 %v1700_v5, %v1898_v38  ;;  %v979_v10 = vmax.f32 %v915_v0, 0.0  ;;  %v1011_v11 = vmax.f32 %v947_v1, 0.0  ;;  %v913_v12 = vadd.f32 %v1903_v40, %v842_v2  ;;  %v595_v14 = vpop.f32.mrf.mxu0  ;;  %v723_v15 = vpop.f32.mrf.mxu1 }
  0xe3   : > { %v945_v13 = vadd.f32 %v1903_v40, %v874_v3  ;;  %1297 = vst.msk [vmem:[%s1918_s6] sm:$0xf] %vm1296_vm3, %v1560_v6  ;;  %1329 = vst.msk [vmem:[%s1918_s6 + $0x80] sm:$0xf] %vm1296_vm3, %v1592_v7  ;;  %v918_v16 = vadd.f32 %v1903_v40, %v847_v8  ;;  %v845_v18 = vmul.f32 %v1898_v38, %v595_v14 }
  0xe4   : > { %v950_v17 = vadd.f32 %v1903_v40, %v879_v9  ;;  %v877_v19 = vmul.f32 %v1898_v38, %v723_v15  ;;  %v1563_v20 = vpack.c.bf16 %v979_v10, %v979_v10  ;;  %v1595_v21 = vpack.c.bf16 %v1011_v11, %v1011_v11  ;;  %v1669_v24 = vpop.f32.mrf.mxu0  ;;  %v1701_v25 = vpop.f32.mrf.mxu1 }
  0xe5   : > { %v977_v22 = vmax.f32 %v913_v12, 0.0  ;;  %v1009_v23 = vmax.f32 %v945_v13, 0.0  ;;  %v982_v26 = vmax.f32 %v918_v16, 0.0  ;;  %v916_v28 = vadd.f32 %v1903_v40, %v845_v18 }
  0xe6   : > { %v1014_v27 = vmax.f32 %v950_v17, 0.0  ;;  %v948_v29 = vadd.f32 %v1903_v40, %v877_v19  ;;  %1300 = vst.msk [vmem:[%s1918_s6 + $0xc] sm:$0xf] %vm1296_vm3, %v1563_v20  ;;  %1332 = vst.msk [vmem:[%s1918_s6 + $0x8c] sm:$0xf] %vm1296_vm3, %v1595_v21  ;;  %v848_v32 = vmul.f32 %v1669_v24, %v1898_v38  ;;  %v880_v33 = vmul.f32 %v1701_v25, %v1898_v38  ;;  %v598_v34 = vpop.f32.mrf.mxu0  ;;  %v726_v35 = vpop.f32.mrf.mxu1 }
  0xe7   : > { %v1561_v30 = vpack.c.bf16 %v977_v22, %v977_v22  ;;  %v1593_v31 = vpack.c.bf16 %v1009_v23, %v1009_v23  ;;  %v1566_v36 = vpack.c.bf16 %v982_v26, %v982_v26  ;;  %v980_v39 = vmax.f32 %v916_v28, 0.0 }
  0xe8   : > { %v1598_v37 = vpack.c.bf16 %v1014_v27, %v1014_v27  ;;  %v1012_v41 = vmax.f32 %v948_v29, 0.0  ;;  %v919_v42 = vadd.f32 %v1903_v40, %v848_v32  ;;  %v951_v43 = vadd.f32 %v1903_v40, %v880_v33  ;;  %v1672_v46 = vpop.f32.mrf.mxu0  ;;  %v1704_v47 = vpop.f32.mrf.mxu1 }
  0xe9   : > { %1298 = vst.msk [vmem:[%s1918_s6 + $0x4] sm:$0xf] %vm1296_vm3, %v1561_v30  ;;  %1330 = vst.msk [vmem:[%s1918_s6 + $0x84] sm:$0xf] %vm1296_vm3, %v1593_v31  ;;  %v846_v44 = vmul.f32 %v1898_v38, %v598_v34  ;;  %v878_v45 = vmul.f32 %v1898_v38, %v726_v35  ;;  %v1564_v48 = vpack.c.bf16 %v980_v39, %v980_v39 }
  0xea   : > { %1303 = vst.msk [vmem:[%s1918_s6 + $0x18] sm:$0xf] %vm1296_vm3, %v1566_v36  ;;  %1335 = vst.msk [vmem:[%s1918_s6 + $0x98] sm:$0xf] %vm1296_vm3, %v1598_v37  ;;  %v1596_v49 = vpack.c.bf16 %v1012_v41, %v1012_v41  ;;  %v851_v50 = vmul.f32 %v1672_v46, %v1898_v38  ;;  %v883_v51 = vmul.f32 %v1704_v47, %v1898_v38  ;;  %v983_v52 = vmax.f32 %v919_v42, 0.0  ;;  %v611_v56 = vpop.f32.mrf.mxu0  ;;  %v739_v57 = vpop.f32.mrf.mxu1 }
  0xeb   : > { %v1015_v53 = vmax.f32 %v951_v43, 0.0  ;;  %v917_v54 = vadd.f32 %v1903_v40, %v846_v44  ;;  %v949_v55 = vadd.f32 %v1903_v40, %v878_v45  ;;  %1301 = vst.msk [vmem:[%s1918_s6 + $0x10] sm:$0xf] %vm1296_vm3, %v1564_v48  ;;  %v849_v60 = vmul.f32 %v1898_v38, %v611_v56 }
  0xec   : > { %1333 = vst.msk [vmem:[%s1918_s6 + $0x90] sm:$0xf] %vm1296_vm3, %v1596_v49  ;;  %v922_v58 = vadd.f32 %v1903_v40, %v851_v50  ;;  %v954_v59 = vadd.f32 %v1903_v40, %v883_v51  ;;  %v881_v61 = vmul.f32 %v1898_v38, %v739_v57  ;;  %v1567_v62 = vpack.c.bf16 %v983_v52, %v983_v52  ;;  %v1673_v2 = vpop.f32.mrf.mxu0  ;;  %v1705_v3 = vpop.f32.mrf.mxu1 }
  0xed   : > { %v1599_v63 = vpack.c.bf16 %v1015_v53, %v1015_v53  ;;  %v981_v0 = vmax.f32 %v917_v54, 0.0  ;;  %v1013_v1 = vmax.f32 %v949_v55, 0.0  ;;  %v920_v6 = vadd.f32 %v1903_v40, %v849_v60 }
  0xee   : > { %v986_v4 = vmax.f32 %v922_v58, 0.0  ;;  %v1018_v5 = vmax.f32 %v954_v59, 0.0  ;;  %v952_v7 = vadd.f32 %v1903_v40, %v881_v61  ;;  %1304 = vst.msk [vmem:[%s1918_s6 + $0x1c] sm:$0xf] %vm1296_vm3, %v1567_v62  ;;  %v852_v10 = vmul.f32 %v1673_v2, %v1898_v38  ;;  %v614_v12 = vpop.f32.mrf.mxu0  ;;  %v742_v13 = vpop.f32.mrf.mxu1 }
  0xef   : > { %1336 = vst.msk [vmem:[%s1918_s6 + $0x9c] sm:$0xf] %vm1296_vm3, %v1599_v63  ;;  %v1565_v8 = vpack.c.bf16 %v981_v0, %v981_v0  ;;  %v1597_v9 = vpack.c.bf16 %v1013_v1, %v1013_v1  ;;  %v884_v11 = vmul.f32 %v1705_v3, %v1898_v38  ;;  %v984_v16 = vmax.f32 %v920_v6, 0.0 }
  0xf0   : > { %v1570_v14 = vpack.c.bf16 %v986_v4, %v986_v4  ;;  %v1602_v15 = vpack.c.bf16 %v1018_v5, %v1018_v5  ;;  %v1016_v17 = vmax.f32 %v952_v7, 0.0  ;;  %v923_v18 = vadd.f32 %v1903_v40, %v852_v10  ;;  %v1676_v22 = vpop.f32.mrf.mxu0  ;;  %v1708_v23 = vpop.f32.mrf.mxu1 }
  0xf1   : > { %1302 = vst.msk [vmem:[%s1918_s6 + $0x14] sm:$0xf] %vm1296_vm3, %v1565_v8  ;;  %1334 = vst.msk [vmem:[%s1918_s6 + $0x94] sm:$0xf] %vm1296_vm3, %v1597_v9  ;;  %v955_v19 = vadd.f32 %v1903_v40, %v884_v11  ;;  %v850_v20 = vmul.f32 %v1898_v38, %v614_v12  ;;  %v882_v21 = vmul.f32 %v1898_v38, %v742_v13 }
  0xf2   : > { %1307 = vst.msk [vmem:[%s1918_s6 + $0x28] sm:$0xf] %vm1296_vm3, %v1570_v14  ;;  %1339 = vst.msk [vmem:[%s1918_s6 + $0xa8] sm:$0xf] %vm1296_vm3, %v1602_v15  ;;  %v1568_v24 = vpack.c.bf16 %v984_v16, %v984_v16  ;;  %v1600_v25 = vpack.c.bf16 %v1016_v17, %v1016_v17  ;;  %v855_v26 = vmul.f32 %v1676_v22, %v1898_v38  ;;  %v987_v28 = vmax.f32 %v923_v18, 0.0  ;;  %v627_v32 = vpop.f32.mrf.mxu0  ;;  %v755_v33 = vpop.f32.mrf.mxu1 }
  0xf3   : > { %v887_v27 = vmul.f32 %v1708_v23, %v1898_v38  ;;  %v1019_v29 = vmax.f32 %v955_v19, 0.0  ;;  %v921_v30 = vadd.f32 %v1903_v40, %v850_v20  ;;  %v953_v31 = vadd.f32 %v1903_v40, %v882_v21 }
  0xf4   : > { %1305 = vst.msk [vmem:[%s1918_s6 + $0x20] sm:$0xf] %vm1296_vm3, %v1568_v24  ;;  %1337 = vst.msk [vmem:[%s1918_s6 + $0xa0] sm:$0xf] %vm1296_vm3, %v1600_v25  ;;  %v926_v34 = vadd.f32 %v1903_v40, %v855_v26  ;;  %v853_v36 = vmul.f32 %v1898_v38, %v627_v32  ;;  %v885_v37 = vmul.f32 %v1898_v38, %v755_v33  ;;  %v1677_v44 = vpop.f32.mrf.mxu0  ;;  %v1709_v45 = vpop.f32.mrf.mxu1 }
  0xf5   : > { %v958_v35 = vadd.f32 %v1903_v40, %v887_v27  ;;  %v1571_v39 = vpack.c.bf16 %v987_v28, %v987_v28  ;;  %v1603_v41 = vpack.c.bf16 %v1019_v29, %v1019_v29  ;;  %v985_v42 = vmax.f32 %v921_v30, 0.0 }
  0xf6   : > { %v1017_v43 = vmax.f32 %v953_v31, 0.0  ;;  %v990_v46 = vmax.f32 %v926_v34, 0.0  ;;  %v924_v48 = vadd.f32 %v1903_v40, %v853_v36  ;;  %v956_v49 = vadd.f32 %v1903_v40, %v885_v37  ;;  %v630_v54 = vpop.f32.mrf.mxu0  ;;  %v758_v55 = vpop.f32.mrf.mxu1 }
  0xf7   : > { %v1022_v47 = vmax.f32 %v958_v35, 0.0  ;;  %1308 = vst.msk [vmem:[%s1918_s6 + $0x2c] sm:$0xf] %vm1296_vm3, %v1571_v39  ;;  %1340 = vst.msk [vmem:[%s1918_s6 + $0xac] sm:$0xf] %vm1296_vm3, %v1603_v41  ;;  %v1569_v50 = vpack.c.bf16 %v985_v42, %v985_v42  ;;  %v856_v52 = vmul.f32 %v1677_v44, %v1898_v38  ;;  %v888_v53 = vmul.f32 %v1709_v45, %v1898_v38 }
  0xf8   : > { %v1601_v51 = vpack.c.bf16 %v1017_v43, %v1017_v43  ;;  %v1574_v56 = vpack.c.bf16 %v990_v46, %v990_v46  ;;  %v988_v58 = vmax.f32 %v924_v48, 0.0  ;;  %v1020_v59 = vmax.f32 %v956_v49, 0.0  ;;  %v1680_v0 = vpop.f32.mrf.mxu0  ;;  %v1712_v1 = vpop.f32.mrf.mxu1 }
  0xf9   : > { %v1606_v57 = vpack.c.bf16 %v1022_v47, %v1022_v47  ;;  %1306 = vst.msk [vmem:[%s1918_s6 + $0x24] sm:$0xf] %vm1296_vm3, %v1569_v50  ;;  %v927_v60 = vadd.f32 %v1903_v40, %v856_v52  ;;  %v959_v61 = vadd.f32 %v1903_v40, %v888_v53  ;;  %v854_v62 = vmul.f32 %v1898_v38, %v630_v54 }
  0xfa   : > { %1338 = vst.msk [vmem:[%s1918_s6 + $0xa4] sm:$0xf] %vm1296_vm3, %v1601_v51  ;;  %v886_v63 = vmul.f32 %v1898_v38, %v758_v55  ;;  %1311 = vst.msk [vmem:[%s1918_s6 + $0x38] sm:$0xf] %vm1296_vm3, %v1574_v56  ;;  %v1572_v2 = vpack.c.bf16 %v988_v58, %v988_v58  ;;  %v1604_v3 = vpack.c.bf16 %v1020_v59, %v1020_v59  ;;  %v643_v10 = vpop.f32.mrf.mxu0  ;;  %v771_v11 = vpop.f32.mrf.mxu1 }
  0xfb   : > { %1343 = vst.msk [vmem:[%s1918_s6 + $0xb8] sm:$0xf] %vm1296_vm3, %v1606_v57  ;;  %v859_v4 = vmul.f32 %v1680_v0, %v1898_v38  ;;  %v891_v5 = vmul.f32 %v1712_v1, %v1898_v38  ;;  %v991_v6 = vmax.f32 %v927_v60, 0.0  ;;  %v1023_v7 = vmax.f32 %v959_v61, 0.0 }
  0xfc   : > { %v925_v8 = vadd.f32 %v1903_v40, %v854_v62  ;;  %v957_v9 = vadd.f32 %v1903_v40, %v886_v63  ;;  %1309 = vst.msk [vmem:[%s1918_s6 + $0x30] sm:$0xf] %vm1296_vm3, %v1572_v2  ;;  %1341 = vst.msk [vmem:[%s1918_s6 + $0xb0] sm:$0xf] %vm1296_vm3, %v1604_v3  ;;  %v857_v14 = vmul.f32 %v1898_v38, %v643_v10  ;;  %v1681_v20 = vpop.f32.mrf.mxu0  ;;  %v1713_v21 = vpop.f32.mrf.mxu1 }
  0xfd   : > { %v930_v12 = vadd.f32 %v1903_v40, %v859_v4  ;;  %v962_v13 = vadd.f32 %v1903_v40, %v891_v5  ;;  %v889_v15 = vmul.f32 %v1898_v38, %v771_v11  ;;  %v1575_v16 = vpack.c.bf16 %v991_v6, %v991_v6 }
  0xfe   : > { %v1607_v17 = vpack.c.bf16 %v1023_v7, %v1023_v7  ;;  %v989_v18 = vmax.f32 %v925_v8, 0.0  ;;  %v1021_v19 = vmax.f32 %v957_v9, 0.0  ;;  %v928_v24 = vadd.f32 %v1903_v40, %v857_v14  ;;  %v646_v30 = vpop.f32.mrf.mxu0  ;;  %v774_v31 = vpop.f32.mrf.mxu1 }
  0xff   : > { %v994_v22 = vmax.f32 %v930_v12, 0.0  ;;  %v1026_v23 = vmax.f32 %v962_v13, 0.0  ;;  %v960_v25 = vadd.f32 %v1903_v40, %v889_v15  ;;  %1312 = vst.msk [vmem:[%s1918_s6 + $0x3c] sm:$0xf] %vm1296_vm3, %v1575_v16  ;;  %v860_v28 = vmul.f32 %v1681_v20, %v1898_v38 }
 0x100   : > { %1344 = vst.msk [vmem:[%s1918_s6 + $0xbc] sm:$0xf] %vm1296_vm3, %v1607_v17  ;;  %v1573_v26 = vpack.c.bf16 %v989_v18, %v989_v18  ;;  %v1605_v27 = vpack.c.bf16 %v1021_v19, %v1021_v19  ;;  %v892_v29 = vmul.f32 %v1713_v21, %v1898_v38  ;;  %v992_v34 = vmax.f32 %v928_v24, 0.0  ;;  %v1684_v42 = vpop.f32.mrf.mxu0  ;;  %v1716_v43 = vpop.f32.mrf.mxu1 }
 0x101   : > { %v1578_v32 = vpack.c.bf16 %v994_v22, %v994_v22  ;;  %v1610_v33 = vpack.c.bf16 %v1026_v23, %v1026_v23  ;;  %v1024_v35 = vmax.f32 %v960_v25, 0.0  ;;  %v931_v36 = vadd.f32 %v1903_v40, %v860_v28 }
 0x102   : > { %1310 = vst.msk [vmem:[%s1918_s6 + $0x34] sm:$0xf] %vm1296_vm3, %v1573_v26  ;;  %1342 = vst.msk [vmem:[%s1918_s6 + $0xb4] sm:$0xf] %vm1296_vm3, %v1605_v27  ;;  %v963_v37 = vadd.f32 %v1903_v40, %v892_v29  ;;  %v858_v39 = vmul.f32 %v1898_v38, %v646_v30  ;;  %v890_v41 = vmul.f32 %v1898_v38, %v774_v31  ;;  %v659_v52 = vpop.f32.mrf.mxu0  ;;  %v787_v53 = vpop.f32.mrf.mxu1 }
 0x103   : > { %1315 = vst.msk [vmem:[%s1918_s6 + $0x48] sm:$0xf] %vm1296_vm3, %v1578_v32  ;;  %1347 = vst.msk [vmem:[%s1918_s6 + $0xc8] sm:$0xf] %vm1296_vm3, %v1610_v33  ;;  %v1576_v44 = vpack.c.bf16 %v992_v34, %v992_v34  ;;  %v1608_v45 = vpack.c.bf16 %v1024_v35, %v1024_v35  ;;  %v863_v46 = vmul.f32 %v1684_v42, %v1898_v38  ;;  %v995_v48 = vmax.f32 %v931_v36, 0.0 }
 0x104   : > { %v895_v47 = vmul.f32 %v1716_v43, %v1898_v38  ;;  %v1027_v49 = vmax.f32 %v963_v37, 0.0  ;;  %v929_v50 = vadd.f32 %v1903_v40, %v858_v39  ;;  %v961_v51 = vadd.f32 %v1903_v40, %v890_v41  ;;  %v1685_v62 = vpop.f32.mrf.mxu0  ;;  %v1717_v63 = vpop.f32.mrf.mxu1 }
 0x105   : > { %1313 = vst.msk [vmem:[%s1918_s6 + $0x40] sm:$0xf] %vm1296_vm3, %v1576_v44  ;;  %1345 = vst.msk [vmem:[%s1918_s6 + $0xc0] sm:$0xf] %vm1296_vm3, %v1608_v45  ;;  %v934_v54 = vadd.f32 %v1903_v40, %v863_v46  ;;  %v861_v56 = vmul.f32 %v1898_v38, %v659_v52  ;;  %v893_v57 = vmul.f32 %v1898_v38, %v787_v53 }
 0x106   : > { %v966_v55 = vadd.f32 %v1903_v40, %v895_v47  ;;  %v1579_v58 = vpack.c.bf16 %v995_v48, %v995_v48  ;;  %v1611_v59 = vpack.c.bf16 %v1027_v49, %v1027_v49  ;;  %v993_v60 = vmax.f32 %v929_v50, 0.0  ;;  %v662_v8 = vpop.f32.mrf.mxu0  ;;  %v790_v9 = vpop.f32.mrf.mxu1 }
 0x107   : > { %v1025_v61 = vmax.f32 %v961_v51, 0.0  ;;  %v998_v0 = vmax.f32 %v934_v54, 0.0  ;;  %v932_v2 = vadd.f32 %v1903_v40, %v861_v56  ;;  %v964_v3 = vadd.f32 %v1903_v40, %v893_v57 }
 0x108   : > { %v1030_v1 = vmax.f32 %v966_v55, 0.0  ;;  %1316 = vst.msk [vmem:[%s1918_s6 + $0x4c] sm:$0xf] %vm1296_vm3, %v1579_v58  ;;  %1348 = vst.msk [vmem:[%s1918_s6 + $0xcc] sm:$0xf] %vm1296_vm3, %v1611_v59  ;;  %v1577_v4 = vpack.c.bf16 %v993_v60, %v993_v60  ;;  %v864_v6 = vmul.f32 %v1685_v62, %v1898_v38  ;;  %v896_v7 = vmul.f32 %v1717_v63, %v1898_v38  ;;  %v1688_v18 = vpop.f32.mrf.mxu0  ;;  %v1720_v19 = vpop.f32.mrf.mxu1 }
 0x109   : > { %v1609_v5 = vpack.c.bf16 %v1025_v61, %v1025_v61  ;;  %v1582_v10 = vpack.c.bf16 %v998_v0, %v998_v0  ;;  %v996_v12 = vmax.f32 %v932_v2, 0.0  ;;  %v1028_v13 = vmax.f32 %v964_v3, 0.0 }
 0x10a   : > { %v1614_v11 = vpack.c.bf16 %v1030_v1, %v1030_v1  ;;  %1314 = vst.msk [vmem:[%s1918_s6 + $0x44] sm:$0xf] %vm1296_vm3, %v1577_v4  ;;  %v935_v14 = vadd.f32 %v1903_v40, %v864_v6  ;;  %v967_v15 = vadd.f32 %v1903_v40, %v896_v7  ;;  %v862_v16 = vmul.f32 %v1898_v38, %v662_v8  ;;  %v675_v28 = vpop.f32.mrf.mxu0  ;;  %v803_v29 = vpop.f32.mrf.mxu1 }
 0x10b   : > { %1346 = vst.msk [vmem:[%s1918_s6 + $0xc4] sm:$0xf] %vm1296_vm3, %v1609_v5  ;;  %v894_v17 = vmul.f32 %v1898_v38, %v790_v9  ;;  %1319 = vst.msk [vmem:[%s1918_s6 + $0x58] sm:$0xf] %vm1296_vm3, %v1582_v10  ;;  %v1580_v20 = vpack.c.bf16 %v996_v12, %v996_v12  ;;  %v1612_v21 = vpack.c.bf16 %v1028_v13, %v1028_v13 }
 0x10c   : > { %1351 = vst.msk [vmem:[%s1918_s6 + $0xd8] sm:$0xf] %vm1296_vm3, %v1614_v11  ;;  %v867_v22 = vmul.f32 %v1688_v18, %v1898_v38  ;;  %v899_v23 = vmul.f32 %v1720_v19, %v1898_v38  ;;  %v999_v24 = vmax.f32 %v935_v14, 0.0  ;;  %v1031_v25 = vmax.f32 %v967_v15, 0.0  ;;  %v1689_v39 = vpop.f32.mrf.mxu0  ;;  %v1721_v41 = vpop.f32.mrf.mxu1 }
 0x10d   : > { %v933_v26 = vadd.f32 %v1903_v40, %v862_v16  ;;  %v965_v27 = vadd.f32 %v1903_v40, %v894_v17  ;;  %1317 = vst.msk [vmem:[%s1918_s6 + $0x50] sm:$0xf] %vm1296_vm3, %v1580_v20  ;;  %1349 = vst.msk [vmem:[%s1918_s6 + $0xd0] sm:$0xf] %vm1296_vm3, %v1612_v21  ;;  %v865_v32 = vmul.f32 %v1898_v38, %v675_v28 }
 0x10e   : > { %v938_v30 = vadd.f32 %v1903_v40, %v867_v22  ;;  %v970_v31 = vadd.f32 %v1903_v40, %v899_v23  ;;  %v897_v33 = vmul.f32 %v1898_v38, %v803_v29  ;;  %v1583_v34 = vpack.c.bf16 %v999_v24, %v999_v24  ;;  %v678_v50 = vpop.f32.mrf.mxu0  ;;  %v806_v51 = vpop.f32.mrf.mxu1 }
 0x10f   : > { %v1615_v35 = vpack.c.bf16 %v1031_v25, %v1031_v25  ;;  %v997_v36 = vmax.f32 %v933_v26, 0.0  ;;  %v1029_v37 = vmax.f32 %v965_v27, 0.0  ;;  %v936_v44 = vadd.f32 %v1903_v40, %v865_v32 }
 0x110   : > { %v1002_v42 = vmax.f32 %v938_v30, 0.0  ;;  %v1034_v43 = vmax.f32 %v970_v31, 0.0  ;;  %v968_v45 = vadd.f32 %v1903_v40, %v897_v33  ;;  %1320 = vst.msk [vmem:[%s1918_s6 + $0x5c] sm:$0xf] %vm1296_vm3, %v1583_v34  ;;  %v868_v48 = vmul.f32 %v1689_v39, %v1898_v38  ;;  %v1692_v60 = vpop.f32.mrf.mxu0  ;;  %v1724_v61 = vpop.f32.mrf.mxu1 }
 0x111   : > { %1352 = vst.msk [vmem:[%s1918_s6 + $0xdc] sm:$0xf] %vm1296_vm3, %v1615_v35  ;;  %v1581_v46 = vpack.c.bf16 %v997_v36, %v997_v36  ;;  %v1613_v47 = vpack.c.bf16 %v1029_v37, %v1029_v37  ;;  %v900_v49 = vmul.f32 %v1721_v41, %v1898_v38  ;;  %v1000_v54 = vmax.f32 %v936_v44, 0.0 }
 0x112   : > { %v1586_v52 = vpack.c.bf16 %v1002_v42, %v1002_v42  ;;  %v1618_v53 = vpack.c.bf16 %v1034_v43, %v1034_v43  ;;  %v1032_v55 = vmax.f32 %v968_v45, 0.0  ;;  %v939_v56 = vadd.f32 %v1903_v40, %v868_v48  ;;  %v691_v6 = vpop.f32.mrf.mxu0  ;;  %v819_v7 = vpop.f32.mrf.mxu1 }
 0x113   : > { %1318 = vst.msk [vmem:[%s1918_s6 + $0x54] sm:$0xf] %vm1296_vm3, %v1581_v46  ;;  %1350 = vst.msk [vmem:[%s1918_s6 + $0xd4] sm:$0xf] %vm1296_vm3, %v1613_v47  ;;  %v971_v57 = vadd.f32 %v1903_v40, %v900_v49  ;;  %v866_v58 = vmul.f32 %v1898_v38, %v678_v50  ;;  %v898_v59 = vmul.f32 %v1898_v38, %v806_v51 }
 0x114   : > { %1323 = vst.msk [vmem:[%s1918_s6 + $0x68] sm:$0xf] %vm1296_vm3, %v1586_v52  ;;  %1355 = vst.msk [vmem:[%s1918_s6 + $0xe8] sm:$0xf] %vm1296_vm3, %v1618_v53  ;;  %v1584_v62 = vpack.c.bf16 %v1000_v54, %v1000_v54  ;;  %v1616_v63 = vpack.c.bf16 %v1032_v55, %v1032_v55  ;;  %v871_v0 = vmul.f32 %v1692_v60, %v1898_v38  ;;  %v1003_v2 = vmax.f32 %v939_v56, 0.0  ;;  %v1693_v16 = vpop.f32.mrf.mxu0  ;;  %v1725_v17 = vpop.f32.mrf.mxu1 }
 0x115   : > { %v903_v1 = vmul.f32 %v1724_v61, %v1898_v38  ;;  %v1035_v3 = vmax.f32 %v971_v57, 0.0  ;;  %v937_v4 = vadd.f32 %v1903_v40, %v866_v58  ;;  %v969_v5 = vadd.f32 %v1903_v40, %v898_v59 }
 0x116   : > { %1321 = vst.msk [vmem:[%s1918_s6 + $0x60] sm:$0xf] %vm1296_vm3, %v1584_v62  ;;  %1353 = vst.msk [vmem:[%s1918_s6 + $0xe0] sm:$0xf] %vm1296_vm3, %v1616_v63  ;;  %v942_v8 = vadd.f32 %v1903_v40, %v871_v0  ;;  %v869_v10 = vmul.f32 %v1898_v38, %v691_v6  ;;  %v901_v11 = vmul.f32 %v1898_v38, %v819_v7  ;;  %v694_v26 = vpop.f32.mrf.mxu0  ;;  %v822_v27 = vpop.f32.mrf.mxu1 }
 0x117   : > { %v974_v9 = vadd.f32 %v1903_v40, %v903_v1  ;;  %v1587_v12 = vpack.c.bf16 %v1003_v2, %v1003_v2  ;;  %v1619_v13 = vpack.c.bf16 %v1035_v3, %v1035_v3  ;;  %v1001_v14 = vmax.f32 %v937_v4, 0.0 }
 0x118   : > { %v1033_v15 = vmax.f32 %v969_v5, 0.0  ;;  %v1006_v18 = vmax.f32 %v942_v8, 0.0  ;;  %v940_v20 = vadd.f32 %v1903_v40, %v869_v10  ;;  %v972_v21 = vadd.f32 %v1903_v40, %v901_v11 }
 0x119   : > { %v1038_v19 = vmax.f32 %v974_v9, 0.0  ;;  %1324 = vst.msk [vmem:[%s1918_s6 + $0x6c] sm:$0xf] %vm1296_vm3, %v1587_v12  ;;  %1356 = vst.msk [vmem:[%s1918_s6 + $0xec] sm:$0xf] %vm1296_vm3, %v1619_v13  ;;  %v1585_v22 = vpack.c.bf16 %v1001_v14, %v1001_v14  ;;  %v872_v24 = vmul.f32 %v1693_v16, %v1898_v38  ;;  %v904_v25 = vmul.f32 %v1725_v17, %v1898_v38 }
 0x11a   : > { %v1617_v23 = vpack.c.bf16 %v1033_v15, %v1033_v15  ;;  %v1590_v28 = vpack.c.bf16 %v1006_v18, %v1006_v18  ;;  %v1004_v30 = vmax.f32 %v940_v20, 0.0  ;;  %v1036_v31 = vmax.f32 %v972_v21, 0.0 }
 0x11b   : > { %v1622_v29 = vpack.c.bf16 %v1038_v19, %v1038_v19  ;;  %1322 = vst.msk [vmem:[%s1918_s6 + $0x64] sm:$0xf] %vm1296_vm3, %v1585_v22  ;;  %v943_v32 = vadd.f32 %v1903_v40, %v872_v24  ;;  %v975_v33 = vadd.f32 %v1903_v40, %v904_v25  ;;  %v870_v34 = vmul.f32 %v1898_v38, %v694_v26 }
 0x11c   : > { %1354 = vst.msk [vmem:[%s1918_s6 + $0xe4] sm:$0xf] %vm1296_vm3, %v1617_v23  ;;  %v902_v35 = vmul.f32 %v1898_v38, %v822_v27  ;;  %1327 = vst.msk [vmem:[%s1918_s6 + $0x78] sm:$0xf] %vm1296_vm3, %v1590_v28  ;;  %v1588_v36 = vpack.c.bf16 %v1004_v30, %v1004_v30  ;;  %v1620_v37 = vpack.c.bf16 %v1036_v31, %v1036_v31 }
 0x11d   : > { %1359 = vst.msk [vmem:[%s1918_s6 + $0xf8] sm:$0xf] %vm1296_vm3, %v1622_v29  ;;  %v1007_v39 = vmax.f32 %v943_v32, 0.0  ;;  %v1039_v41 = vmax.f32 %v975_v33, 0.0  ;;  %v941_v42 = vadd.f32 %v1903_v40, %v870_v34 }
 0x11e   : > { %v973_v43 = vadd.f32 %v1903_v40, %v902_v35  ;;  %1325 = vst.msk [vmem:[%s1918_s6 + $0x70] sm:$0xf] %vm1296_vm3, %v1588_v36  ;;  %1357 = vst.msk [vmem:[%s1918_s6 + $0xf0] sm:$0xf] %vm1296_vm3, %v1620_v37 }
 0x11f   : > { %v1591_v38 = vpack.c.bf16 %v1007_v39, %v1007_v39  ;;  %v1623_v44 = vpack.c.bf16 %v1039_v41, %v1039_v41  ;;  %v1005_v45 = vmax.f32 %v941_v42, 0.0 }
 0x120   : > { %v1037_v46 = vmax.f32 %v973_v43, 0.0 }
 0x121   : > { %1328 = vst.msk [vmem:[%s1918_s6 + $0x7c] sm:$0xf] %vm1296_vm3, %v1591_v38  ;;  %1360 = vst.msk [vmem:[%s1918_s6 + $0xfc] sm:$0xf] %vm1296_vm3, %v1623_v44  ;;  %v1589_v47 = vpack.c.bf16 %v1005_v45, %v1005_v45 }
 0x122   : > { %v1621_v48 = vpack.c.bf16 %v1037_v46, %v1037_v46 }
 0x123   : > { %1326 = vst.msk [vmem:[%s1918_s6 + $0x74] sm:$0xf] %vm1296_vm3, %v1589_v47 }
 0x124   : > { %1358 = vst.msk [vmem:[%s1918_s6 + $0xf4] sm:$0xf] %vm1296_vm3, %v1621_v48 }
 0x125 PF: > { %s14_s15 = sadd.s32 1, %s1779_s15  }
 0x126   : > { %p11_p4 = scmp.ge.s32.totalorder %s14_s15, 38  }
 0x128   :  { %13 = sbr.rel (!%p11_p4) target bundleno = 1 (0x1), region = 66 }

</bundles_post_ra>
